<compile_context>
chip_gen: v7x
topology: tpu7x:2x2x1
jax: 0.10.0
libtpu: 0.0.40
codegen_flags: <defaults>
</compile_context>

<pallas_src>
import functools

import jax
import jax.numpy as jnp
from jax import lax
from jax.experimental import pallas as pl
from jax.experimental.pallas import tpu as pltpu


def _round_up(x, m):
    return ((x + m - 1) // m) * m


def _vmem_budget_bytes():
    """Generation-aware VMEM budget: ~65% of per-core VMEM, capped at 96 MiB."""
    cap = 64 * 1024 * 1024  # conservative fallback (v7x per-TC VMEM)
    try:
        info = pltpu.get_tpu_info()
        cap = int(getattr(info, "vmem_capacity_bytes", cap))
    except Exception:
        pass
    return max(16 * 1024 * 1024, min(int(cap * 0.65), 96 * 1024 * 1024))


def _patch_embed_matmul_kernel(p_ref, w_ref, b_ref, o_ref):
    # p_ref: (TILE_M, K) bf16    w_ref: (K, D) bf16 (resident across grid)
    # b_ref: (1, D) f32          o_ref: (TILE_M, D) f32
    acc = jnp.dot(p_ref[...], w_ref[...], preferred_element_type=jnp.float32)
    o_ref[...] = (acc + b_ref[...]).astype(o_ref.dtype)


@functools.partial(jax.jit, static_argnames=("kernel_size", "stride", "padding"))
def patch_embed_forward(x, weight, bias, *, kernel_size, stride, padding):
    """Equivalent of PatchEmbed.forward (norm=None).

    x:      (B, C, H, W)   float32  (NCHW, as PyTorch)
    weight: (D, C, KH, KW) float32  (PyTorch Conv2d OIHW layout)
    bias:   (D,)           float32
    returns (x_out, hw_shape) where x_out is (B, Hout*Wout, D).
    """
    B, C, H, W = x.shape
    D = weight.shape[0]
    kh, kw = kernel_size
    K = C * kh * kw

    # --- im2col: one fused XLA gather (NHWC out), feature order (c, kh, kw)
    #     matching weight.reshape(D, K).  Patches kept bf16 in HBM to halve
    #     the dominant HBM pass (intentional precision trade; f32 accumulate).
    patches = lax.conv_general_dilated_patches(
        x.astype(jnp.bfloat16),
        filter_shape=(kh, kw),
        window_strides=stride,
        padding=[(padding[0], padding[0]), (padding[1], padding[1])],
        dimension_numbers=("NCHW", "OIHW", "NHWC"),
    )
    _, h_out, w_out, _ = patches.shape
    hw_shape = (h_out, w_out)
    M = B * h_out * w_out

    p_mat = patches.reshape(M, K)                        # free view, no padding
    w_mat = weight.reshape(D, K).T.astype(jnp.bfloat16)  # (K, D), no padding
    b_mat = bias.reshape(1, D).astype(jnp.float32)

    # --- M tiling: large tiles (amortize ~0.35us/grid-step), >= 2 balanced
    #     grid steps (v7x has 2 TCs), multiple of 8 sublanes, VMEM-capped.
    target_tile_m = 2048
    n_steps = pl.cdiv(M, target_tile_m)
    n_steps = max(2, n_steps + (n_steps % 2))            # even, >= 2
    tile_m = max(8, _round_up(pl.cdiv(M, n_steps), 8))

    k_pad = _round_up(K, 128)                            # Mosaic internal lane pad
    d_pad = _round_up(D, 128)
    budget = _vmem_budget_bytes()

    def _footprint(tm):
        return (2 * tm * k_pad * 2        # double-buffered patches tile (bf16)
                + 2 * tm * d_pad * 4      # double-buffered output tile (f32)
                + 2 * k_pad * d_pad * 2   # resident weight (double-buffered)
                + 2 * 8 * d_pad * 4)      # bias

    while tile_m > 8 and _footprint(tile_m) > budget:
        tile_m = max(8, _round_up(tile_m // 2, 8))

    grid = (pl.cdiv(M, tile_m),)

    cost = pl.CostEstimate(
        flops=2 * M * K * D,
        transcendentals=0,
        bytes_accessed=M * K * 2 + K * D * 2 + D * 4 + M * D * 4,
    )

    out = pl.pallas_call(
        _patch_embed_matmul_kernel,
        out_shape=jax.ShapeDtypeStruct((M, D), jnp.float32),
        grid=grid,
        in_specs=[
            pl.BlockSpec((tile_m, K), lambda i: (i, 0)),  # row tile of patches
            pl.BlockSpec((K, D), lambda i: (0, 0)),       # resident weight
            pl.BlockSpec((1, D), lambda i: (0, 0)),       # resident bias
        ],
        out_specs=pl.BlockSpec((tile_m, D), lambda i: (i, 0)),
        compiler_params=pltpu.CompilerParams(
            dimension_semantics=("parallel",),            # shard rows over TCs
            vmem_limit_bytes=budget,
        ),
        cost_estimate=cost,
    )(p_mat, w_mat, b_mat)

    # (B, Hout*Wout, D) == proj(x).flatten(2).transpose(1, 2); free reshape.
    x_out = out.reshape(B, h_out * w_out, D)
    return x_out, hw_shape


if __name__ == "__main__":
    # Small, module-consistent shapes:
    #   img_size=16, kernel_size=7, stride=4, padding=2, in_chans=4, embed_dim=32
    B, C, H, W = 2, 4, 16, 16
    D = 32
    kernel_size = (7, 7)
    stride = (4, 4)
    padding = (2, 2)

    key = jax.random.PRNGKey(0)
    kx, kw_key, kb_key = jax.random.split(key, 3)
    x = jax.random.normal(kx, (B, C, H, W), dtype=jnp.float32)
    # Deterministic synthetic Conv2d parameters (PyTorch layout: OIHW).
    weight = 0.05 * jax.random.normal(kw_key, (D, C, *kernel_size), dtype=jnp.float32)
    bias = 0.05 * jax.random.normal(kb_key, (D,), dtype=jnp.float32)

    out, hw_shape = patch_embed_forward(
        x, weight, bias, kernel_size=kernel_size, stride=stride, padding=padding
    )
    out = jax.block_until_ready(out)

    # Reference: high-precision XLA conv on the same bf16-rounded operands
    # (the kernel feeds the MXU bf16 inputs with f32 accumulation).
    x_bf = x.astype(jnp.bfloat16).astype(jnp.float32)
    w_bf = weight.astype(jnp.bfloat16).astype(jnp.float32)
    ref = lax.conv_general_dilated(
        x_bf, w_bf, window_strides=stride, padding=[padding, padding],
        dimension_numbers=("NCHW", "OIHW", "NCHW"),
        precision=lax.Precision.HIGHEST,
    ) + bias[None, :, None, None]
    ref = ref.reshape(B, D, -1).transpose(0, 2, 1)

    h_out, w_out = int(hw_shape[0]), int(hw_shape[1])
    assert out.shape == (B, h_out * w_out, D), out.shape
    assert (h_out, w_out) == (4, 4), (h_out, w_out)
    assert jnp.allclose(out, ref, atol=1e-2, rtol=1e-2), "mismatch vs XLA conv"
    print("KERNEL_OK")
</pallas_src>

<mosaic_0001>
module attributes {stable_mosaic.version = 11 : i64} {
  func.func @_patch_embed_matmul_kernel(%arg0: i32, %arg1: memref<16x196xbf16, #tpu.memory_space<vmem>>, %arg2: memref<196x32xbf16, #tpu.memory_space<vmem>>, %arg3: memref<1x32xf32, #tpu.memory_space<vmem>>, %arg4: memref<16x32xf32, #tpu.memory_space<vmem>>) attributes {dimension_semantics = [#tpu.dimension_semantics<parallel>], iteration_bounds = array<i64: 2>, scalar_prefetch = 0 : i64, scratch_operands = 0 : i64, tpu.core_type = #tpu.core_type<tc>, window_params = [{transform_indices = @transform_0, window_bounds = array<i64: 16, 196>}, {pipeline_mode = #tpu.pipeline_mode<synchronous>, transform_indices = @transform_1, window_bounds = array<i64: 196, 32>}, {pipeline_mode = #tpu.pipeline_mode<synchronous>, transform_indices = @transform_2, window_bounds = array<i64: 1, 32>}, {transform_indices = @transform_3, window_bounds = array<i64: 16, 32>}]} {
    %c0 = arith.constant 0 : index
    %c0_0 = arith.constant 0 : index
    %0 = vector.load %arg1[%c0, %c0_0] : memref<16x196xbf16, #tpu.memory_space<vmem>>, vector<16x196xbf16>
    %c0_1 = arith.constant 0 : index
    %c0_2 = arith.constant 0 : index
    %1 = vector.load %arg2[%c0_1, %c0_2] : memref<196x32xbf16, #tpu.memory_space<vmem>>, vector<196x32xbf16>
    %cst = arith.constant dense<0.000000e+00> : vector<16x32xf32>
    %2 = tpu.matmul %0, %1, %cst {dimension_numbers = #tpu.dot_dimension_numbers<[1], [0], [0], [1], [0, 0, 1, 1], [], []>} : vector<16x196xbf16>, vector<196x32xbf16>, vector<16x32xf32> -> vector<16x32xf32>
    %c0_3 = arith.constant 0 : index
    %c0_4 = arith.constant 0 : index
    %3 = vector.load %arg3[%c0_3, %c0_4] : memref<1x32xf32, #tpu.memory_space<vmem>>, vector<1x32xf32>
    %4 = vector.broadcast %3 : vector<1x32xf32> to vector<16x32xf32>
    %5 = arith.addf %2, %4 : vector<16x32xf32>
    %c0_5 = arith.constant 0 : index
    %c0_6 = arith.constant 0 : index
    %6 = vector.load %arg4[%c0_5, %c0_6] : memref<16x32xf32, #tpu.memory_space<vmem>>, vector<16x32xf32>
    tpu.vector_store %arg4[%c0_5, %c0_6], %5 {strides = array<i32>} : memref<16x32xf32, #tpu.memory_space<vmem>>, vector<16x32xf32>,
    return
  }
  func.func @transform_0(%arg0: i32) -> (i32, i32) {
    %c0_i32 = arith.constant 0 : i32
    %c0_i32_0 = arith.constant 0 : i32
    return %arg0, %c0_i32 : i32, i32
  }
  func.func @transform_1(%arg0: i32) -> (i32, i32) {
    %c0_i32 = arith.constant 0 : i32
    %c0_i32_0 = arith.constant 0 : i32
    %c0_i32_1 = arith.constant 0 : i32
    return %c0_i32, %c0_i32_0 : i32, i32
  }
  func.func @transform_2(%arg0: i32) -> (i32, i32) {
    %c0_i32 = arith.constant 0 : i32
    %c0_i32_0 = arith.constant 0 : i32
    %c0_i32_1 = arith.constant 0 : i32
    return %c0_i32, %c0_i32_0 : i32, i32
  }
  func.func @transform_3(%arg0: i32) -> (i32, i32) {
    %c0_i32 = arith.constant 0 : i32
    %c0_i32_0 = arith.constant 0 : i32
    return %arg0, %c0_i32 : i32, i32
  }
}

</mosaic_0001>

<bundles_post_ra>
// kernel: patch_embed_forward.1
= control target key start
LH: loop header
LB: loop body
LE: loop exit
PB: predicated region body
PF: predicated region fallthrough
CT: control target
= control target key end

     0   :  { %8 = vsyncpa [#allocation3], 0  ;;  %s748_s0 = inlined_call_operand.vmem [shape: bf16[32,196], index: 0, kind: input, shape index: {}]   ;;  %s749_s1 = inlined_call_operand.vmem [shape: bf16[196,32], index: 1, kind: input, shape index: {}]   ;;  %s750_s2 = inlined_call_operand.vmem [shape: f32[1,32], index: 2, kind: input, shape index: {}]   ;;  %s751_s3 = inlined_call_operand.hbm [shape: f32[32,32], index: 3, kind: output, shape index: {}]  }
   0x1   :  { %10 = vsyncpa [#allocation3 + $0x1], 0  ;;  %s600_s12 = smov 0   ;;  %s602_s13 = smov 0  }
   0x2   :  { %s604_s14 = smov 0   ;;  %s606_s15 = smov 0  }
   0x3 LB: > { %s621_s16 = sadd.s32 4294967295, %s574_s15   ;;  %s422_s17 = sadd.s32 4294967294, %s574_s15   ;;  %s574_s15 = sphi %s606_s15, %s757_s15   ;;  %s570_s14 = sphi %s604_s14, %s756_s14   ;;  %s566_s13 = sphi %s602_s13, %s755_s13   ;;  %s562_s12 = sphi %s600_s12, %s754_s12  }
   0x4   : > { %s625_s18 = sadd.s32 1, %s574_s15   ;;  %s91_s19 = sadd.s32 1, %s570_s14 }
   0x5   : > { %s88_s20 = ssub.s32 %s574_s15, %s625_s18  ;;  %p101_p0 = scmp.ne.s32.totalorder %s570_s14, %s566_s13 }
   0x6   : > { %p89_p1 = scmp.eq.s32.totalorder %s88_s20, 0  ;;  %p102_p2 = scmp.eq.s32.totalorder %s621_s16, 1 }
   0x7   : > { %p107_p3 = scmp.ne.s32.totalorder %s566_s13, %s562_s12  ;;  %p108_p4 = scmp.eq.s32.totalorder %s422_s17, 1 }
   0x8   : > { %s636_s21 = scalar_select %p89_p1, %s570_s14, %s91_s19  }
   0x9   : > { %p638_p5 = por %p102_p2, %p101_p0  ;;  %p642_p6 = por %p108_p4, %p107_p3 }
   0xa   : > { %p425_p7 = scmp.ge.s32.totalorder %s574_s15, 1  ;;  %p142_p8 = scmp.lt.s32.totalorder %s574_s15, 3 }
   0xc   : > { %p143_p9 = pnand %p425_p7, %p142_p8 }
   0xd   : > { %v496_v0 = vld [vmem:[%s749_s1] sm:$0xff] (!%p143_p9)   ;;  %v576_v1 = vmov (!%p143_p9), 0   ;;  %v497_v2 = vld [vmem:[%s749_s1 + $0x8] sm:$0xff] (!%p143_p9)   ;;  %s427_s28 = sshll.u32 (!%p143_p9), %s621_s16, 1  ;;  %v498_v3 = vld [vmem:[%s749_s1 + $0x10] sm:$0xff] (!%p143_p9)   ;;  %vm294_vm0 = vcmask (!%p143_p9), 556032  }
   0xe   : > { %146 = sbr.rel (%p143_p9) target bundleno = 297 (0x129), region = 32  ;;  %302 = vmatprep.subr.bf16.mxu0 (!%p143_p9), %v576_v1  ;;  %p168_p10 = scmp.lt.s32.totalorder (!%p143_p9), %s427_s28, 3  ;;  %v499_v4 = vld [vmem:[%s749_s1 + $0x18] sm:$0xff] (!%p143_p9)   ;;  %v500_v6 = vld [vmem:[%s749_s1 + $0x20] sm:$0xff] (!%p143_p9)   ;;  %v501_v7 = vld [vmem:[%s749_s1 + $0x28] sm:$0xff] (!%p143_p9)   ;;  %vm298_vm1 = vcmask (!%p143_p9), 1041408  }
   0xf   : > { %303 = vmatpush1.bf16.msra.mxu0 (!%p143_p9), %v496_v0  ;;  %v502_v8 = vld [vmem:[%s749_s1 + $0x30] sm:$0xff] (!%p143_p9)   ;;  %v503_v9 = vld [vmem:[%s749_s1 + $0x38] sm:$0xff] (!%p143_p9)   ;;  %v504_v10 = vld [vmem:[%s749_s1 + $0x40] sm:$0xff] (!%p143_p9)   ;;  %s164_s11 = sand.u32 (!%p143_p9), 1, %s566_s13   ;;  %s453_s26 = sshll.u32 (!%p143_p9), %s621_s16, 8  ;;  %vm343_vm2 = vcmask (!%p143_p9), 261120  }
  0x10   : > { %304 = vmatprep.subr.bf16.mxu0 (!%p143_p9), %v576_v1  ;;  %v505_v11 = vld [vmem:[%s749_s1 + $0x48] sm:$0xff] (!%p143_p9)   ;;  %v506_v12 = vld [vmem:[%s749_s1 + $0x50] sm:$0xff] (!%p143_p9)   ;;  %v507_v13 = vld [vmem:[%s749_s1 + $0x58] sm:$0xff] (!%p143_p9)   ;;  %s426_s17 = sshll.u32 (!%p143_p9), %s164_s11, 4  ;;  %s707_s16 = scalar_lea.sflag (!%p143_p9), [#allocation3], %s164_s11 }
  0x11   : > { %v508_v14 = vld [vmem:[%s749_s1 + $0x60] ss:$0 sps:$4 sm:$0x33] (!%p143_p9)   ;;  %s166_s24 = scalar_lea.vmem (!%p143_p9), [#allocation2], %s426_s17  ;;  %s577_s30 = smov (!%p143_p9), [#allocation2]  }
  0x12   : > { %v300_v15 = vsel (!%p143_p9), %vm298_vm1, %v508_v14, 0  ;;  %v430_v17 = vld [vmem:[%s750_s2] ss:$0 sm:$0xff] (!%p143_p9)  ;;  %s360_s25 = sshll.u32 (!%p143_p9), %s166_s24, 4  ;;  %s700_s25 = int_to_ptr.vmem [resolvable:$true] %s360_s25 }
  0x13   : > { %305 = vmatpush1.bf16.msra.mxu0 (!%p143_p9), %v497_v2  ;;  %s512_s29 = scalar_lea.vmem (!%p143_p9), %s700_s25, 256 }
  0x14   : > { %306 = vmatprep.subr.bf16.mxu0 (!%p143_p9), %v576_v1  ;;  %p513_p11 = scmp.ne.s32.totalorder (!%p143_p9), %s700_s25, %s512_s29 }
  0x15   : > { %s759_s28 = smov (!%p168_p10, %s427_s28), 3 }
  0x16   : > { %s452_s4 = sshll.u32 %s759_s28, 3  ;;  %s705_s28 = scalar_lea.hbm %s751_s3, %s453_s26 }
  0x17   : > { %307 = vmatpush1.bf16.msra.mxu0 %v498_v3  ;;  %s664_s9 = scalar_lea.vmem %s748_s0, %s452_s4  ;;  %p514_p12 = pnand %p513_p11, %p638_p5 }
  0x18   : > { %308 = vmatprep.subr.bf16.mxu0 %v576_v1  ;;  %v511_v5 = vld [vmem:[%s664_s9 + $0x4] ss:$8 sps:$4 sm:$0xff]   ;;  %v509_v16 = vld [vmem:[%s664_s9] ss:$8 sps:$4 sm:$0xff]   ;;  %s516_s4 = sshll.u32 %s577_s30, 4  ;;  %s517_s4 = int_to_ptr.vmem [resolvable:$false] %s516_s4 }
  0x19   : > { %446 = vmatprep.mubr.msk.bf16.mxu0 %vm294_vm0, %v511_v5  ;;  %p515_p13 = pneg %p514_p12  ;;  %s518_s5 = scalar_lea.vmem %s517_s4, 512 }
  0x1a   : > { %p519_p0 = scmp.lt.s32.totalorder %s700_s25, %s517_s4  ;;  %p520_p1 = scmp.lt.s32.totalorder %s518_s5, %s512_s29 }
  0x1b   : > { %309 = vmatpush1.bf16.msra.mxu0 %v499_v4 }
  0x1c   : > { %310 = vmatprep.subr.bf16.mxu0 %v576_v1  ;;  %p521_p2 = por %p520_p1, %p519_p0 }
  0x1e   : > { %p522_p3 = pnand %p521_p2, %p515_p13 }
  0x1f   : > { %311 = vmatpush1.bf16.msra.mxu0 %v500_v6 }
  0x20   : > { %312 = vmatprep.subr.bf16.mxu0 %v576_v1 }
  0x23   : > { %313 = vmatpush1.bf16.msra.mxu0 %v501_v7 }
  0x24   : > { %314 = vmatprep.subr.bf16.mxu0 %v576_v1 }
  0x27   : > { %315 = vmatpush1.bf16.msra.mxu0 %v502_v8 }
  0x28   : > { %316 = vmatprep.subr.bf16.mxu0 %v576_v1 }
  0x2b   : > { %317 = vmatpush1.bf16.msra.mxu0 %v503_v9 }
  0x2c   : > { %318 = vmatprep.subr.bf16.mxu0 %v576_v1 }
  0x2f   : > { %319 = vmatpush1.bf16.msra.mxu0 %v504_v10 }
  0x30   : > { %320 = vmatprep.subr.bf16.mxu0 %v576_v1 }
  0x33   : > { %321 = vmatpush1.bf16.msra.mxu0 %v505_v11 }
  0x34   : > { %322 = vmatprep.subr.bf16.mxu0 %v576_v1 }
  0x37   : > { %323 = vmatpush1.bf16.msra.mxu0 %v506_v12 }
  0x38   : > { %324 = vmatprep.subr.bf16.mxu0 %v576_v1 }
  0x3b   : > { %325 = vmatpush1.bf16.msra.mxu0 %v507_v13 }
  0x3c   : > { %326 = vmatprep.subr.bf16.mxu0 %v576_v1 }
  0x3f   : > { %327 = vmatpush1.bf16.msra.mxu0 %v300_v15 }
  0x42   : > { %335 = vmatmul.mubr.bf16.vlgmr.msra.gmra.mrb[0].mxu0 %v509_v16 }
 0x115   : > { %v336_v18 = vpop.f32.mrb[0].mxu0 }
 0x116   : > { %v337_v19 = vadd.f32 %v430_v17, %v336_v18  ;;  %v338_v20 = vpop.f32.mrb[1].mxu0 }
 0x117   : > { %v339_v21 = vpop.f32.mrb[2].mxu0 }
 0x118   : > { %344 = vst.msk [vmem:[%s166_s24] sm:$0xff] %vm343_vm2, %v337_v19  ;;  %v340_v22 = vadd.f32 %v430_v17, %v339_v21  ;;  %v341_v23 = vpop.f32.mrb[3].mxu0 }
 0x11a   : > { %345 = vst.msk [vmem:[%s166_s24 + $0x8] sm:$0xff] %vm343_vm2, %v340_v22 }
 0x11b   : > { %525 = shalt.err (!%p522_p3)
}
 0x11c   : > { %s526_s6 = scalar_lea.hbm %s705_s28, 256  ;;  %s530_s10 = scalar_lea.hbm %s751_s3, 512 }
 0x11d   : > { %p527_p4 = scmp.ne.s32.totalorder %s705_s28, %s526_s6  ;;  %p531_p9 = scmp.lt.u32.totalorder %s705_s28, %s751_s3 }
 0x11e   : > { %p532_p10 = scmp.lt.u32.totalorder %s530_s10, %s526_s6  ;;  %p534_p12 = scmp.lt.u32.totalorder %s526_s6, %s705_s28 }
 0x11f   : > { %p528_p7 = pnand %p527_p4, %p638_p5 }
 0x120   : > { %p533_p11 = por %p532_p10, %p531_p9 }
 0x121   : > { %p529_p8 = pneg %p528_p7 }
 0x122   : > { %p535_p13 = por %p534_p12, %p533_p11 }
 0x124   : > { %p536_p0 = pnand %p535_p13, %p529_p8 }
 0x126   : > { %539 = shalt.err (!%p536_p0)
}
 0x127   : > { %s578_s19 = smov 128   ;;  %s579_s20 = smov 8  }
 0x128   : > { %454 = dma.vmem_to_hbm [thread:$0]  (%p638_p5), %s700_s25, 256, %s705_s28, %s707_s16, %s578_s19, %s578_s19, %s579_s20  }
 0x129 PF: > { %p460_p1 = scmp.ge.s32.totalorder %s574_s15, 2  ;;  %s375_s24 = sand.u32 1, %s562_s12  }
 0x12a   : > { %s376_s26 = scalar_lea.sflag [#allocation3], %s375_s24 }
 0x12b   : > { %p457_p2 = pnand %p460_p1, %p642_p6 }
 0x12d   : > { %557 = dma.done.wait (!%p457_p2), %s376_s26, 256  }
 0x12e   : > { %559 = vsyncadd (!%p457_p2), %s376_s26, 4294967040  ;;  %p13_p3 = scmp.ge.s32.totalorder %s625_s18, 4   ;;  %s754_s12 = smov %s566_s13 }
 0x12f   : > { %s755_s13 = smov %s570_s14  ;;  %s756_s14 = smov %s636_s21 }
 0x130   : > { %s757_s15 = smov %s625_s18  ;;  %15 = sbr.rel (!%p13_p3) target bundleno = 3 (0x3), region = 67 }
 0x137   :  { %381 = vsyncpa [#allocation3], 1 }
 0x138   :  { %383 = vsyncpa [#allocation3 + $0x1], 1 }

</bundles_post_ra>
